<compile_context>
chip_gen: v5e
topology: v5e:2x2
jax: 0.10.0
libtpu: 0.0.40
codegen_flags: <defaults>
</compile_context>

<pallas_src>
import functools

import jax
import jax.numpy as jnp
from jax.experimental import pallas as pl
from jax.experimental.pallas import tpu as pltpu


def _swish_kernel(x_ref, o_ref, *, compute_f32):
    x = x_ref[...]
    xf = x.astype(jnp.float32) if compute_f32 else x
    # SiLU via tanh: x*sigmoid(x) == 0.5*x*(tanh(0.5*x)+1).
    # Single EUP op (tanh) + VALU mul/add — no full-precision divide, so the
    # VALU slot never binds and the kernel stays HBM-bound on all generations.
    half = 0.5 * xf
    y = half * (jnp.tanh(half) + 1.0)
    o_ref[...] = y.astype(o_ref.dtype)


# Widest lane-dense last dim we try for the 2D slab (all multiples of 128).
_LANE_CANDIDATES = (2048, 1024, 512, 256, 128)
# Prefer >= this many grid steps (pipelining + v7x dual-TC sharding) ...
_MIN_GRID_STEPS = 8
# ... but never split blocks below this size (per-step overhead amortisation).
_MIN_BLOCK_BYTES = 512 * 1024
# Tensors smaller than this go through the fused plain-JAX path.
_MIN_KERNEL_ELEMS = 1024


def _tpu_generation():
    """Best-effort TPU generation probe ('v5' / 'v6' / 'v7' / None)."""
    try:
        kind = jax.devices()[0].device_kind.lower()
    except Exception:  # pragma: no cover - defensive only
        return None
    for gen in ("v7", "v6", "v5", "v4"):
        if gen in kind:
            return gen
    return None


def _select_config(dtype):
    """(block_bytes, vmem_limit_bytes, compute_f32) per TPU generation."""
    gen = _tpu_generation()
    if gen in ("v6", "v5"):
        # 128 MiB physical VMEM: fat 8 MiB blocks, 64 MiB scoped limit.
        block_bytes = 8 * 1024 * 1024
        vmem_limit = 64 * 1024 * 1024
    else:
        # v7x (64 MiB VMEM/TC) or unknown: stay conservative.
        block_bytes = 4 * 1024 * 1024
        vmem_limit = 48 * 1024 * 1024
    # bf16 math on v6e/v7x (bf16 VPU/EUP); upcast to f32 on v5e/older or when
    # the input is already f32 (upcast is then a no-op).
    compute_f32 = (dtype == jnp.float32) or gen not in ("v6", "v7")
    if compute_f32 and jnp.dtype(dtype).itemsize < 4:
        # f32 intermediates double in-VMEM footprint for sub-32-bit inputs;
        # halve the block so the scoped limit keeps comfortable headroom.
        block_bytes //= 2
    return block_bytes, vmem_limit, compute_f32


def _swish_jax(x):
    # Fused single-pass fallback for tiny / unaligned tensors.
    return (x * jax.nn.sigmoid(x)).astype(x.dtype)


def _pick_row_tile(rows, lw, itemsize, block_bytes):
    """Row-tile: big blocks, but keep >=2 grid steps when the slab allows."""
    if rows <= 8:
        return rows  # full-extent block along rows is always legal
    tr = max(8, (block_bytes // (lw * itemsize)) // 8 * 8)
    # Target step count: >=2 (v7x dual-TC sharding + DMA/compute overlap),
    # up to _MIN_GRID_STEPS as long as each block stays >= _MIN_BLOCK_BYTES.
    steps_fat = (rows * lw * itemsize) // _MIN_BLOCK_BYTES
    target_steps = int(min(_MIN_GRID_STEPS, max(2, steps_fat)))
    target_steps = min(target_steps, rows // 8)  # each block >= 8 rows
    if target_steps >= 2:
        tr = min(tr, max(8, (rows // target_steps) // 8 * 8))
    # tr < rows => multiple of 8; tr == rows => full extent. Both legal.
    return min(tr, rows)


def swish(x):
    """Elementwise SiLU, same semantics as torch.nn.SiLU (no parameters)."""
    orig_shape = x.shape
    dtype = x.dtype
    n = x.size
    if n == 0:
        return x
    if n % 128 != 0 or n < _MIN_KERNEL_ELEMS:
        # Unaligned / tiny: XLA's fused x*sigmoid(x) is already a single
        # ~roofline HBM pass; a head-kernel + concatenate would add a full
        # extra read+write pass, so don't do it.
        return _swish_jax(x)

    x_flat = x.reshape(-1)
    itemsize = jnp.dtype(dtype).itemsize

    # Widest lane width that divides n -> no padding copies at all.
    lw = next(c for c in _LANE_CANDIDATES if n % c == 0)
    rows = n // lw
    x2d = x_flat.reshape(rows, lw)

    block_bytes, vmem_limit, compute_f32 = _select_config(dtype)
    tr = _pick_row_tile(rows, lw, itemsize, block_bytes)
    grid = (pl.cdiv(rows, tr),)  # ragged last block is masked by Pallas

    kernel = functools.partial(_swish_kernel, compute_f32=compute_f32)

    out2d = pl.pallas_call(
        kernel,
        out_shape=jax.ShapeDtypeStruct((rows, lw), dtype),
        grid_spec=pltpu.PrefetchScalarGridSpec(
            num_scalar_prefetch=0,
            grid=grid,
            in_specs=[pl.BlockSpec((tr, lw), lambda i: (i, 0))],
            out_specs=pl.BlockSpec((tr, lw), lambda i: (i, 0)),
        ),
        compiler_params=pltpu.CompilerParams(
            dimension_semantics=("parallel",),
            vmem_limit_bytes=vmem_limit,
        ),
        # Same shape/dtype in and out, and the in/out index_maps are IDENTICAL
        # (block i is read before block i is written), so in-place HBM reuse
        # is safe. NOTE: if either index_map ever changes, drop this alias.
        input_output_aliases={0: 0},
        cost_estimate=pl.CostEstimate(
            flops=4 * n, transcendentals=n, bytes_accessed=2 * n * itemsize),
    )(x2d)

    return out2d.reshape(orig_shape)


if __name__ == "__main__":
    key = jax.random.PRNGKey(0)
    # NCHW input, consistent with PyTorch conv-style activations.
    x = jax.random.normal(key, (2, 4, 16, 16), dtype=jnp.float32)
    y_ref = x * jax.nn.sigmoid(x)

    y = swish(x)
    jax.block_until_ready(y)
    assert y.shape == x.shape and y.dtype == x.dtype
    assert jnp.max(jnp.abs(y - y_ref)) < 1e-5

    # bf16 path: native bf16 math on v6e/v7x, f32 upcast on v5e.
    xb = jax.random.normal(jax.random.PRNGKey(1), (8, 32, 32), dtype=jnp.bfloat16)
    xb_f32 = xb.astype(jnp.float32)
    yb_ref = xb_f32 * jax.nn.sigmoid(xb_f32)
    yb = swish(xb)
    jax.block_until_ready(yb)
    assert yb.shape == xb.shape and yb.dtype == xb.dtype
    assert jnp.max(jnp.abs(yb.astype(jnp.float32) - yb_ref)) < 1e-1  # bf16 math

    # Unaligned total size: single fused plain-JAX pass (no concatenate).
    x2 = jax.random.normal(jax.random.PRNGKey(2), (3, 67), dtype=jnp.float32)
    y2 = swish(x2)
    jax.block_until_ready(y2)
    assert jnp.max(jnp.abs(y2 - x2 * jax.nn.sigmoid(x2))) < 1e-5

    print("KERNEL_OK")
</pallas_src>

<mosaic_0001>
module attributes {stable_mosaic.version = 11 : i64} {
  func.func @_swish_kernel(%arg0: i32, %arg1: memref<1x2048xf32, #tpu.memory_space<vmem>>, %arg2: memref<1x2048xf32, #tpu.memory_space<vmem>>) attributes {dimension_semantics = [#tpu.dimension_semantics<parallel>], iteration_bounds = array<i64: 1>, scalar_prefetch = 0 : i64, scratch_operands = 0 : i64, tpu.core_type = #tpu.core_type<tc>, window_params = [{transform_indices = @transform_0, window_bounds = array<i64: 1, 2048>}, {transform_indices = @transform_1, window_bounds = array<i64: 1, 2048>}]} {
    %c0 = arith.constant 0 : index
    %c0_0 = arith.constant 0 : index
    %0 = vector.load %arg1[%c0, %c0_0] : memref<1x2048xf32, #tpu.memory_space<vmem>>, vector<1x2048xf32>
    %cst = arith.constant 5.000000e-01 : f32
    %1 = vector.broadcast %cst : f32 to vector<1x2048xf32>
    %2 = arith.mulf %1, %0 : vector<1x2048xf32>
    %3 = math.tanh %2 : vector<1x2048xf32>
    %cst_1 = arith.constant 1.000000e+00 : f32
    %4 = vector.broadcast %cst_1 : f32 to vector<1x2048xf32>
    %5 = arith.addf %3, %4 : vector<1x2048xf32>
    %6 = arith.mulf %2, %5 : vector<1x2048xf32>
    %c0_2 = arith.constant 0 : index
    %c0_3 = arith.constant 0 : index
    %7 = vector.load %arg2[%c0_2, %c0_3] : memref<1x2048xf32, #tpu.memory_space<vmem>>, vector<1x2048xf32>
    tpu.vector_store %arg2[%c0_2, %c0_3], %6 {strides = array<i32>} : memref<1x2048xf32, #tpu.memory_space<vmem>>, vector<1x2048xf32>,
    return
  }
  func.func @transform_0(%arg0: i32) -> (i32, i32) {
    %c0_i32 = arith.constant 0 : i32
    %c0_i32_0 = arith.constant 0 : i32
    return %arg0, %c0_i32 : i32, i32
  }
  func.func @transform_1(%arg0: i32) -> (i32, i32) {
    %c0_i32 = arith.constant 0 : i32
    %c0_i32_0 = arith.constant 0 : i32
    return %arg0, %c0_i32 : i32, i32
  }
}

</mosaic_0001>

<bundles_post_ra>
// kernel: tpu_custom_call.1
= control target key start
LH: loop header
LB: loop body
LE: loop exit
PB: predicated region body
PF: predicated region fallthrough
CT: control target
= control target key end

     0   :  { %6 = vsyncpa [#allocation3], 0  ;;  %s128_s0 = inlined_call_operand.hbm [shape: f32[1,2048], index: 0, kind: input, shape index: {}, may-alias: {0,1}]   ;;  %s129_s1 = inlined_call_operand.hbm [shape: f32[1,2048], index: 1, kind: output, shape index: {}, may-alias: {0,1}]  }
   0x1   :  { %7 = vsyncpa [#allocation4], 0  ;;  %s13_s8 = sshll.u32 %s128_s0, 4  ;;  %s110_s9 = smov [#allocation2]   ;;  %s14_s8 = int_to_ptr.hbm [resolvable:$true] %s13_s8 }
   0x2   :  { %s15_s10 = sshll.u32 %s110_s9, 4  ;;  %s16_s10 = int_to_ptr.vmem [resolvable:$true] %s15_s10 }
   0x3   :  { %18 = dma.hbm_to_vmem [thread:$0]  %s14_s8, 256, %s16_s10, [#allocation3]  }
   0x4   :  { %106 = dma.done.wait [#allocation3], 256  }
   0x5   :  { %107 = vsyncadd [#allocation3], 4294967040  ;;  %v23_v0 = vld [vmem:[#allocation2] sm:$0xff]  ;;  %v24_v1 = vld [vmem:[#allocation2 + $0x8] sm:$0xff]  ;;  %s111_s11 = smov [#allocation5]   ;;  %s42_s14 = sshll.u32 %s129_s1, 4  ;;  %s43_s14 = int_to_ptr.hbm [resolvable:$true] %s42_s14 }
   0x6   :  { %v25_v2 = vmul.f32 0.5, %v23_v0  ;;  %v26_v3 = vmul.f32 0.5, %v24_v1  ;;  %s40_s12 = sshll.u32 %s111_s11, 4  ;;  %s41_s12 = int_to_ptr.vmem [resolvable:$true] %s40_s12 }
   0x8   :  { %54 = vtanh.f32 %v25_v2 }
   0x9   :  { %56 = vtanh.f32 %v26_v3 }
   0xe   :  { %v55_v4 = vpop.eup %54 }
   0xf   :  { %v57_v5 = vpop.eup %56  ;;  %v29_v6 = vadd.f32 1.0, %v55_v4 }
  0x10   :  { %v30_v7 = vadd.f32 1.0, %v57_v5 }
  0x11   :  { %v31_v8 = vmul.f32 %v29_v6, %v25_v2 }
  0x12   :  { %v32_v9 = vmul.f32 %v30_v7, %v26_v3 }
  0x13   :  { %33 = vst [vmem:[#allocation5] sm:$0xff] %v31_v8 }
  0x14   :  { %34 = vst [vmem:[#allocation5 + $0x8] sm:$0xff] %v32_v9 }
  0x15   :  { %45 = dma.vmem_to_hbm [thread:$0]  %s41_s12, 256, %s43_s14, [#allocation4]  }
  0x16   :  { %108 = dma.done.wait [#allocation4], 256  }
  0x17   :  { %109 = vsyncadd [#allocation4], 4294967040 }
  0x18   :  { %50 = vsyncpa [#allocation3], 1 }
  0x19   :  { %51 = vsyncpa [#allocation4], 1 }

</bundles_post_ra>
